<compile_context>
chip_gen: v6e
topology: v6e:2x2x1
jax: 0.10.0
libtpu: 0.0.40
codegen_flags: <defaults>
</compile_context>

<pallas_src>
import jax
import jax.numpy as jnp
from jax.experimental import pallas as pl
from jax.experimental.pallas import tpu as pltpu

IN_FEATURES = 512 * 4        # 2048
Z_DIM = 128
OUT_DIM = 2 * Z_DIM          # fused mu ++ log_var = 256
BATCH_TILE = 256             # multiple of 8; ~2 MiB f32 x-tile per block


def _latent_encoder_kernel(x_ref, w_ref, b_ref, mu_ref, lv_ref):
    """Fused Linear: (bm, 2048)f32 -> bf16 @ (2048, 256)bf16 + (1, 256)f32.

    Writes the two 128-wide heads directly as separate lane-dense outputs.
    """
    # In-VMEM cast (once per block); f32 accumulation on the MXU.
    x = x_ref[...].astype(jnp.bfloat16)
    acc = jnp.dot(x, w_ref[...], preferred_element_type=jnp.float32)
    out = acc + b_ref[...]
    # Lane slices at 0 / 128 are vreg-tile aligned -> no copy / relayout.
    mu_ref[...] = out[:, :Z_DIM].astype(mu_ref.dtype)
    lv_ref[...] = out[:, Z_DIM:].astype(lv_ref.dtype)


def prep_latent_encoder_params(w_mu, b_mu, w_var, b_var, compute_dtype=jnp.bfloat16):
    """One-time (outside jit) packing of PyTorch-layout params.

    w_mu / w_var: (z_dim, 2048) PyTorch (out, in) layout.
    Returns:
      w_fused: (2048, 2*z_dim) in compute_dtype   (x @ W layout)
      b_fused: (1, 2*z_dim) float32
    """
    w_fused = jnp.concatenate([w_mu.T, w_var.T], axis=1).astype(compute_dtype)
    b_fused = jnp.concatenate([b_mu, b_var]).reshape(1, -1).astype(jnp.float32)
    return w_fused, b_fused


def latent_encoder_forward(x_hiddens, w_fused, b_fused):
    """x_hiddens: (B, 512, 2, 2) f32.  Returns (mu, log_var), each (B, Z_DIM) f32."""
    B = x_hiddens.shape[0]
    # flatten(start_dim=1): same C-order flatten as torch.flatten.  No dtype
    # cast here — the bf16 cast happens inside the kernel (in VMEM).
    x2d = x_hiddens.reshape(B, -1)
    assert x2d.shape[1] == IN_FEATURES
    out_dim = w_fused.shape[1]
    assert out_dim == OUT_DIM

    # cdiv batch tiling: fixed bm for large B (partial last block handled by
    # Pallas), single full-array block for small B.
    bm = B if B <= BATCH_TILE else BATCH_TILE
    grid = (pl.cdiv(B, bm),)

    cost = pl.CostEstimate(
        flops=2 * B * IN_FEATURES * out_dim,
        transcendentals=0,
        bytes_accessed=(x2d.size * 4                                  # f32 activations
                        + w_fused.size * w_fused.dtype.itemsize       # bf16 weights
                        + b_fused.size * 4                            # f32 bias
                        + 2 * B * Z_DIM * 4),                         # f32 mu + log_var
    )

    mu, log_var = pl.pallas_call(
        _latent_encoder_kernel,
        out_shape=(jax.ShapeDtypeStruct((B, Z_DIM), jnp.float32),
                   jax.ShapeDtypeStruct((B, Z_DIM), jnp.float32)),
        grid=grid,
        in_specs=[
            pl.BlockSpec((bm, IN_FEATURES), lambda i: (i, 0)),
            pl.BlockSpec((IN_FEATURES, OUT_DIM), lambda i: (0, 0)),  # weights pinned
            pl.BlockSpec((1, OUT_DIM), lambda i: (0, 0)),            # bias pinned
        ],
        out_specs=(
            pl.BlockSpec((bm, Z_DIM), lambda i: (i, 0)),             # mu
            pl.BlockSpec((bm, Z_DIM), lambda i: (i, 0)),             # log_var
        ),
        compiler_params=pltpu.CompilerParams(
            dimension_semantics=("parallel",)),
        cost_estimate=cost,
    )(x2d, w_fused, b_fused)

    return mu, log_var


def _init_params(key, z_dim=Z_DIM):
    """Deterministic synthetic parameter init (shapes match nn.Linear)."""
    k1, k2, k3, k4 = jax.random.split(key, 4)
    bound = 1.0 / (IN_FEATURES ** 0.5)
    w_mu = jax.random.uniform(k1, (z_dim, IN_FEATURES), jnp.float32, -bound, bound)
    b_mu = jax.random.uniform(k2, (z_dim,), jnp.float32, -bound, bound)
    w_var = jax.random.uniform(k3, (z_dim, IN_FEATURES), jnp.float32, -bound, bound)
    b_var = jax.random.uniform(k4, (z_dim,), jnp.float32, -bound, bound)
    return w_mu, b_mu, w_var, b_var


if __name__ == "__main__":
    key = jax.random.PRNGKey(0)
    k_x, k_p = jax.random.split(key)

    # Input consistent with the module: flatten(start_dim=1) must yield 512*4
    # features, e.g. hidden feature maps of shape (B, 512, 2, 2).
    B = 2
    x_hiddens = jax.random.normal(k_x, (B, 512, 2, 2), jnp.float32)
    w_mu, b_mu, w_var, b_var = _init_params(k_p)

    # One-time parameter packing (hoisted out of the per-call jitted path).
    w_fused, b_fused = prep_latent_encoder_params(w_mu, b_mu, w_var, b_var)

    fwd = jax.jit(latent_encoder_forward)
    mu, log_var = fwd(x_hiddens, w_fused, b_fused)
    jax.block_until_ready((mu, log_var))

    # Cross-check against the f32 reference of the PyTorch math.
    # bf16 matmul inputs (f32 accumulation) => loose tolerance.
    x2d = x_hiddens.reshape(B, -1)
    mu_ref = x2d @ w_mu.T + b_mu
    lv_ref = x2d @ w_var.T + b_var
    assert mu.shape == (B, Z_DIM) and log_var.shape == (B, Z_DIM)
    assert mu.dtype == jnp.float32 and log_var.dtype == jnp.float32
    assert jnp.allclose(mu, mu_ref, atol=2e-2, rtol=2e-2)
    assert jnp.allclose(log_var, lv_ref, atol=2e-2, rtol=2e-2)

    print("KERNEL_OK")
</pallas_src>

<mosaic_0001>
module attributes {stable_mosaic.version = 11 : i64} {
  func.func @_latent_encoder_kernel(%arg0: i32, %arg1: memref<2x2048xf32, #tpu.memory_space<vmem>>, %arg2: memref<2048x256xbf16, #tpu.memory_space<vmem>>, %arg3: memref<1x256xf32, #tpu.memory_space<vmem>>, %arg4: memref<2x128xf32, #tpu.memory_space<vmem>>, %arg5: memref<2x128xf32, #tpu.memory_space<vmem>>) attributes {dimension_semantics = [#tpu.dimension_semantics<parallel>], iteration_bounds = array<i64: 1>, scalar_prefetch = 0 : i64, scratch_operands = 0 : i64, tpu.core_type = #tpu.core_type<tc>, window_params = [{transform_indices = @transform_0, window_bounds = array<i64: 2, 2048>}, {pipeline_mode = #tpu.pipeline_mode<synchronous>, transform_indices = @transform_1, window_bounds = array<i64: 2048, 256>}, {pipeline_mode = #tpu.pipeline_mode<synchronous>, transform_indices = @transform_2, window_bounds = array<i64: 1, 256>}, {transform_indices = @transform_3, window_bounds = array<i64: 2, 128>}, {transform_indices = @transform_4, window_bounds = array<i64: 2, 128>}]} {
    %c0 = arith.constant 0 : index
    %c0_0 = arith.constant 0 : index
    %0 = vector.load %arg1[%c0, %c0_0] : memref<2x2048xf32, #tpu.memory_space<vmem>>, vector<2x2048xf32>
    %1 = arith.truncf %0 : vector<2x2048xf32> to vector<2x2048xbf16>
    %c0_1 = arith.constant 0 : index
    %c0_2 = arith.constant 0 : index
    %2 = vector.load %arg2[%c0_1, %c0_2] : memref<2048x256xbf16, #tpu.memory_space<vmem>>, vector<2048x256xbf16>
    %cst = arith.constant dense<0.000000e+00> : vector<2x256xf32>
    %3 = tpu.matmul %1, %2, %cst {dimension_numbers = #tpu.dot_dimension_numbers<[1], [0], [0], [1], [0, 0, 1, 1], [], []>} : vector<2x2048xbf16>, vector<2048x256xbf16>, vector<2x256xf32> -> vector<2x256xf32>
    %c0_3 = arith.constant 0 : index
    %c0_4 = arith.constant 0 : index
    %4 = vector.load %arg3[%c0_3, %c0_4] : memref<1x256xf32, #tpu.memory_space<vmem>>, vector<1x256xf32>
    %5 = vector.broadcast %4 : vector<1x256xf32> to vector<2x256xf32>
    %6 = arith.addf %3, %5 : vector<2x256xf32>
    %7 = vector.extract_strided_slice %6 {offsets = [0, 0], sizes = [2, 128], strides = [1, 1]} : vector<2x256xf32> to vector<2x128xf32>
    %c0_5 = arith.constant 0 : index
    %c0_6 = arith.constant 0 : index
    %8 = vector.load %arg4[%c0_5, %c0_6] : memref<2x128xf32, #tpu.memory_space<vmem>>, vector<2x128xf32>
    tpu.vector_store %arg4[%c0_5, %c0_6], %7 {strides = array<i32>} : memref<2x128xf32, #tpu.memory_space<vmem>>, vector<2x128xf32>,
    %9 = vector.extract_strided_slice %6 {offsets = [0, 128], sizes = [2, 128], strides = [1, 1]} : vector<2x256xf32> to vector<2x128xf32>
    %c0_7 = arith.constant 0 : index
    %c0_8 = arith.constant 0 : index
    %10 = vector.load %arg5[%c0_7, %c0_8] : memref<2x128xf32, #tpu.memory_space<vmem>>, vector<2x128xf32>
    tpu.vector_store %arg5[%c0_7, %c0_8], %9 {strides = array<i32>} : memref<2x128xf32, #tpu.memory_space<vmem>>, vector<2x128xf32>,
    return
  }
  func.func @transform_0(%arg0: i32) -> (i32, i32) {
    %c0_i32 = arith.constant 0 : i32
    %c0_i32_0 = arith.constant 0 : i32
    return %arg0, %c0_i32 : i32, i32
  }
  func.func @transform_1(%arg0: i32) -> (i32, i32) {
    %c0_i32 = arith.constant 0 : i32
    %c0_i32_0 = arith.constant 0 : i32
    %c0_i32_1 = arith.constant 0 : i32
    return %c0_i32, %c0_i32_0 : i32, i32
  }
  func.func @transform_2(%arg0: i32) -> (i32, i32) {
    %c0_i32 = arith.constant 0 : i32
    %c0_i32_0 = arith.constant 0 : i32
    %c0_i32_1 = arith.constant 0 : i32
    return %c0_i32, %c0_i32_0 : i32, i32
  }
  func.func @transform_3(%arg0: i32) -> (i32, i32) {
    %c0_i32 = arith.constant 0 : i32
    %c0_i32_0 = arith.constant 0 : i32
    return %arg0, %c0_i32 : i32, i32
  }
  func.func @transform_4(%arg0: i32) -> (i32, i32) {
    %c0_i32 = arith.constant 0 : i32
    %c0_i32_0 = arith.constant 0 : i32
    return %arg0, %c0_i32 : i32, i32
  }
}

</mosaic_0001>

<bundles_post_ra>
// kernel: latent_encoder_forward.1
= control target key start
LH: loop header
LB: loop body
LE: loop exit
PB: predicated region body
PF: predicated region fallthrough
CT: control target
= control target key end

     0   :  { %10 = vsyncpa [#allocation3], 0  ;;  %v2723_v36 = vmov 1983009808   ;;  %v30_v38 = vlaneseq  ;;  %s3591_s0 = inlined_call_operand.vmem [shape: f32[2,2048], index: 0, kind: input, shape index: {}]   ;;  %s3592_s1 = inlined_call_operand.vmem [shape: bf16[2048,256], index: 1, kind: input, shape index: {}]   ;;  %s3593_s2 = inlined_call_operand.vmem [shape: f32[1,256], index: 2, kind: input, shape index: {}]   ;;  %s3594_s3 = inlined_call_operand.hbm [shape: f32[2,128], index: 3, kind: output, shape index: {0}]   ;;  %s3595_s4 = inlined_call_operand.hbm [shape: f32[2,128], index: 4, kind: output, shape index: {1}]  }
   0x1   :  { %v2291_v0 = vld [vmem:[%s3592_s1 + $0x74] ss:$8 sps:$4 sm:$0xff]   ;;  %v2295_v2 = vld [vmem:[%s3592_s1 + $0x70] ss:$8 sps:$4 sm:$0xff]   ;;  %v2297_v4 = vld [vmem:[%s3592_s1 + $0x64] ss:$8 sps:$4 sm:$0xff]   ;;  %v28_v37 = vunpack.c.l.s4 %v2723_v36 }
   0x2   :  { %v2293_v1 = vld [vmem:[%s3592_s1 + $0x174] ss:$8 sps:$4 sm:$0xff]   ;;  %1674 = vmatprep.subr.bf16.mxu0 %v2291_v0  ;;  %v2296_v3 = vld [vmem:[%s3592_s1 + $0x170] ss:$8 sps:$4 sm:$0xff]   ;;  %v2299_v5 = vld [vmem:[%s3592_s1 + $0x164] ss:$8 sps:$4 sm:$0xff]  }
   0x3   :  { %1715 = vmatprep.subr.bf16.mxu1 %v2293_v1  ;;  %1675 = vmatpush1.bf16.msra.mxu0 %v2295_v2  ;;  %v2301_v6 = vld [vmem:[%s3592_s1 + $0x60] ss:$8 sps:$4 sm:$0xff]   ;;  %v2303_v8 = vld [vmem:[%s3592_s1 + $0x54] ss:$8 sps:$4 sm:$0xff]   ;;  %v2307_v10 = vld [vmem:[%s3592_s1 + $0x50] ss:$8 sps:$4 sm:$0xff]   ;;  %v29_v42 = vunpack.c.0.s8 %v28_v37 }
   0x4   :  { %1716 = vmatpush1.bf16.msra.mxu1 %v2296_v3  ;;  %1676 = vmatprep.subr.bf16.mxu0 %v2297_v4  ;;  %v2302_v7 = vld [vmem:[%s3592_s1 + $0x160] ss:$8 sps:$4 sm:$0xff]   ;;  %v2305_v9 = vld [vmem:[%s3592_s1 + $0x154] ss:$8 sps:$4 sm:$0xff]   ;;  %v2308_v11 = vld [vmem:[%s3592_s1 + $0x150] ss:$8 sps:$4 sm:$0xff]  }
   0x5   :  { %1717 = vmatprep.subr.bf16.mxu1 %v2299_v5  ;;  %v2309_v12 = vld [vmem:[%s3592_s1 + $0x44] ss:$8 sps:$4 sm:$0xff]   ;;  %v2313_v14 = vld [vmem:[%s3592_s1 + $0x40] ss:$8 sps:$4 sm:$0xff]   ;;  %v2315_v16 = vld [vmem:[%s3592_s1 + $0x34] ss:$8 sps:$4 sm:$0xff]  }
   0x6   :  { %v2311_v13 = vld [vmem:[%s3592_s1 + $0x144] ss:$8 sps:$4 sm:$0xff]   ;;  %v2314_v15 = vld [vmem:[%s3592_s1 + $0x140] ss:$8 sps:$4 sm:$0xff]   ;;  %v2317_v17 = vld [vmem:[%s3592_s1 + $0x134] ss:$8 sps:$4 sm:$0xff]  }
   0x7   :  { %1677 = vmatpush1.bf16.msra.mxu0 %v2301_v6  ;;  %v2319_v18 = vld [vmem:[%s3592_s1 + $0x30] ss:$8 sps:$4 sm:$0xff]   ;;  %v2321_v20 = vld [vmem:[%s3592_s1 + $0x24] ss:$8 sps:$4 sm:$0xff]   ;;  %v2325_v22 = vld [vmem:[%s3592_s1 + $0x20] ss:$8 sps:$4 sm:$0xff]  }
   0x8   :  { %1718 = vmatpush1.bf16.msra.mxu1 %v2302_v7  ;;  %1678 = vmatprep.subr.bf16.mxu0 %v2303_v8  ;;  %v2320_v19 = vld [vmem:[%s3592_s1 + $0x130] ss:$8 sps:$4 sm:$0xff]   ;;  %v2323_v21 = vld [vmem:[%s3592_s1 + $0x124] ss:$8 sps:$4 sm:$0xff]   ;;  %v2326_v23 = vld [vmem:[%s3592_s1 + $0x120] ss:$8 sps:$4 sm:$0xff]  }
   0x9   :  { %1719 = vmatprep.subr.bf16.mxu1 %v2305_v9  ;;  %v2327_v24 = vld [vmem:[%s3592_s1 + $0x14] ss:$8 sps:$4 sm:$0xff]   ;;  %v2331_v26 = vld [vmem:[%s3592_s1 + $0x10] ss:$8 sps:$4 sm:$0xff]   ;;  %v2333_v28 = vld [vmem:[%s3592_s1 + $0x4] ss:$8 sps:$4 sm:$0xff]  }
   0xa   :  { %v2329_v25 = vld [vmem:[%s3592_s1 + $0x114] ss:$8 sps:$4 sm:$0xff]   ;;  %v2332_v27 = vld [vmem:[%s3592_s1 + $0x110] ss:$8 sps:$4 sm:$0xff]   ;;  %v2335_v29 = vld [vmem:[%s3592_s1 + $0x104] ss:$8 sps:$4 sm:$0xff]  }
   0xb   :  { %1679 = vmatpush1.bf16.msra.mxu0 %v2307_v10  ;;  %v2337_v30 = vld [vmem:[%s3592_s1] ss:$8 sps:$4 sm:$0xff]   ;;  %v2339_v32 = vld [vmem:[%s3592_s1 + $0xf4] ss:$8 sps:$4 sm:$0xff]   ;;  %v2343_v34 = vld [vmem:[%s3592_s1 + $0xf0] ss:$8 sps:$4 sm:$0xff]  }
   0xc   :  { %1720 = vmatpush1.bf16.msra.mxu1 %v2308_v11  ;;  %1680 = vmatprep.subr.bf16.mxu0 %v2309_v12  ;;  %v2338_v31 = vld [vmem:[%s3592_s1 + $0x100] ss:$8 sps:$4 sm:$0xff]   ;;  %v2341_v33 = vld [vmem:[%s3592_s1 + $0x1f4] ss:$8 sps:$4 sm:$0xff]   ;;  %v2344_v35 = vld [vmem:[%s3592_s1 + $0x1f0] ss:$8 sps:$4 sm:$0xff]  }
   0xd   :  { %1721 = vmatprep.subr.bf16.mxu1 %v2311_v13  ;;  %v2345_v39 = vld [vmem:[%s3592_s1 + $0xe4] ss:$8 sps:$4 sm:$0xff]   ;;  %v2349_v41 = vld [vmem:[%s3592_s1 + $0xe0] ss:$8 sps:$4 sm:$0xff]   ;;  %v2868_v43 = vshrl.u32 %v30_v38, 7 }
   0xe   :  { %v2347_v40 = vld [vmem:[%s3592_s1 + $0x1e4] ss:$8 sps:$4 sm:$0xff]   ;;  %v2350_v44 = vld [vmem:[%s3592_s1 + $0x1e0] ss:$8 sps:$4 sm:$0xff]   ;;  %v2351_v45 = vld [vmem:[%s3592_s1 + $0xd4] ss:$8 sps:$4 sm:$0xff]  }
   0xf   :  { %1681 = vmatpush1.bf16.msra.mxu0 %v2313_v14  ;;  %v2353_v46 = vld [vmem:[%s3592_s1 + $0x1d4] ss:$8 sps:$4 sm:$0xff]   ;;  %v2355_v47 = vld [vmem:[%s3592_s1 + $0xd0] ss:$8 sps:$4 sm:$0xff]   ;;  %v2886_v49 = vsub.s32 %v29_v42, %v2868_v43  ;;  %v2357_v50 = vld [vmem:[%s3592_s1 + $0xc4] ss:$8 sps:$4 sm:$0xff]  }
  0x10   :  { %1722 = vmatpush1.bf16.msra.mxu1 %v2314_v15  ;;  %1682 = vmatprep.subr.bf16.mxu0 %v2315_v16  ;;  %v2356_v48 = vld [vmem:[%s3592_s1 + $0x1d0] ss:$8 sps:$4 sm:$0xff]   ;;  %v2359_v51 = vld [vmem:[%s3592_s1 + $0x1c4] ss:$8 sps:$4 sm:$0xff]   ;;  %v2361_v53 = vld [vmem:[%s3592_s1 + $0xc0] ss:$8 sps:$4 sm:$0xff]  }
  0x11   :  { %1723 = vmatprep.subr.bf16.mxu1 %v2317_v17  ;;  %v18_v52 = vld [vmem:[%s3591_s0] sm:$0xff]  ;;  %v2363_v57 = vld [vmem:[%s3592_s1 + $0xb4] ss:$8 sps:$4 sm:$0xff]   ;;  %v2367_v61 = vld [vmem:[%s3592_s1 + $0xb0] ss:$8 sps:$4 sm:$0xff]  }
  0x12   :  { %v33_v54 = vrot.slane %v18_v52, %v2886_v49  ;;  %v26_v55 = vcombine.high %v18_v52, %v18_v52  ;;  %v2362_v56 = vld [vmem:[%s3592_s1 + $0x1c0] ss:$8 sps:$4 sm:$0xff]   ;;  %v2365_v58 = vld [vmem:[%s3592_s1 + $0x1b4] ss:$8 sps:$4 sm:$0xff]   ;;  %v2368_v0 = vld [vmem:[%s3592_s1 + $0x1b0] ss:$8 sps:$4 sm:$0xff]  }
  0x13   :  { %1683 = vmatpush1.bf16.msra.mxu0 %v2319_v18  ;;  %v2369_v1 = vld [vmem:[%s3592_s1 + $0xa4] ss:$8 sps:$4 sm:$0xff]   ;;  %v2373_v4 = vld [vmem:[%s3592_s1 + $0xa0] ss:$8 sps:$4 sm:$0xff]   ;;  %v2375_v6 = vld [vmem:[%s3592_s1 + $0x94] ss:$8 sps:$4 sm:$0xff]  }
  0x14   :  { %1724 = vmatpush1.bf16.msra.mxu1 %v2320_v19  ;;  %1684 = vmatprep.subr.bf16.mxu0 %v2321_v20  ;;  %v41_v59 = vcombine.high %v33_v54, %v33_v54  ;;  %v40_v60 = vrot.slane %v26_v55, %v2886_v49  ;;  %v2371_v2 = vld [vmem:[%s3592_s1 + $0x1a4] ss:$8 sps:$4 sm:$0xff]   ;;  %v2374_v5 = vld [vmem:[%s3592_s1 + $0x1a0] ss:$8 sps:$4 sm:$0xff]   ;;  %v2377_v7 = vld [vmem:[%s3592_s1 + $0x194] ss:$8 sps:$4 sm:$0xff]   ;;  %v110_v16 = vpack.c.bf16 %v33_v54, %v33_v54 }
  0x15   :  { %1725 = vmatprep.subr.bf16.mxu1 %v2323_v21  ;;  %v2379_v8 = vld [vmem:[%s3592_s1 + $0x90] ss:$8 sps:$4 sm:$0xff]   ;;  %v2381_v10 = vld [vmem:[%s3592_s1 + $0x84] ss:$8 sps:$4 sm:$0xff]   ;;  %v2385_v12 = vld [vmem:[%s3592_s1 + $0x80] ss:$8 sps:$4 sm:$0xff]  }
  0x16   :  { %v111_v62 = vpack.c.bf16 %v41_v59, %v41_v59  ;;  %v42_v63 = vcombine.high %v40_v60, %v40_v60  ;;  %v2380_v9 = vld [vmem:[%s3592_s1 + $0x190] ss:$8 sps:$4 sm:$0xff]   ;;  %v2383_v11 = vld [vmem:[%s3592_s1 + $0x184] ss:$8 sps:$4 sm:$0xff]   ;;  %v2386_v13 = vld [vmem:[%s3592_s1 + $0x180] ss:$8 sps:$4 sm:$0xff]   ;;  %v112_v17 = vpack.c.bf16 %v40_v60, %v40_v60 }
  0x17   :  { %1685 = vmatpush1.bf16.msra.mxu0 %v2325_v22  ;;  %v2390_v14 = vld [vmem:[%s3592_s1 + $0x274] ss:$8 sps:$4 sm:$0xff]   ;;  %v2388_v18 = vld [vmem:[%s3592_s1 + $0x270] ss:$8 sps:$4 sm:$0xff]   ;;  %v2396_v20 = vld [vmem:[%s3592_s1 + $0x264] ss:$8 sps:$4 sm:$0xff]  }
  0x18   :  { %1726 = vmatpush1.bf16.msra.mxu1 %v2326_v23  ;;  %1686 = vmatprep.subr.bf16.mxu0 %v2327_v24  ;;  %v113_v3 = vpack.c.bf16 %v42_v63, %v42_v63  ;;  %v2393_v15 = vld [vmem:[%s3592_s1 + $0x374] ss:$8 sps:$4 sm:$0xff]   ;;  %v2391_v19 = vld [vmem:[%s3592_s1 + $0x370] ss:$8 sps:$4 sm:$0xff]   ;;  %v2399_v21 = vld [vmem:[%s3592_s1 + $0x364] ss:$8 sps:$4 sm:$0xff]  }
  0x19   :  { %1727 = vmatprep.subr.bf16.mxu1 %v2329_v25  ;;  %1706 = vmatprep.mubr.bf16.mxu0 %v111_v62  ;;  %v2394_v22 = vld [vmem:[%s3592_s1 + $0x260] ss:$8 sps:$4 sm:$0xff]   ;;  %v2402_v24 = vld [vmem:[%s3592_s1 + $0x254] ss:$8 sps:$4 sm:$0xff]   ;;  %v2420_v36 = vld [vmem:[%s3592_s1 + $0x224] ss:$8 sps:$4 sm:$0xff]  }
  0x1a   :  { %1747 = vmatprep.mubr.bf16.mxu1 %v113_v3  ;;  %v2397_v23 = vld [vmem:[%s3592_s1 + $0x360] ss:$8 sps:$4 sm:$0xff]   ;;  %v2405_v25 = vld [vmem:[%s3592_s1 + $0x354] ss:$8 sps:$4 sm:$0xff]   ;;  %v2423_v37 = vld [vmem:[%s3592_s1 + $0x324] ss:$8 sps:$4 sm:$0xff]  }
  0x1b   :  { %1687 = vmatpush1.bf16.msra.mxu0 %v2331_v26  ;;  %v2400_v26 = vld [vmem:[%s3592_s1 + $0x250] ss:$8 sps:$4 sm:$0xff]   ;;  %v2418_v38 = vld [vmem:[%s3592_s1 + $0x220] ss:$8 sps:$4 sm:$0xff]   ;;  %v2435_v52 = vld [vmem:[%s3592_s1 + $0x304] ss:$8 sps:$4 sm:$0xff]  }
  0x1c   :  { %1728 = vmatpush1.bf16.msra.mxu1 %v2332_v27  ;;  %1688 = vmatprep.subr.bf16.mxu0 %v2333_v28  ;;  %v2403_v27 = vld [vmem:[%s3592_s1 + $0x350] ss:$8 sps:$4 sm:$0xff]   ;;  %v2408_v28 = vld [vmem:[%s3592_s1 + $0x244] ss:$8 sps:$4 sm:$0xff]   ;;  %v2430_v55 = vld [vmem:[%s3592_s1 + $0x200] ss:$8 sps:$4 sm:$0xff]  }
  0x1d   :  { %1729 = vmatprep.subr.bf16.mxu1 %v2335_v29  ;;  %v2411_v29 = vld [vmem:[%s3592_s1 + $0x344] ss:$8 sps:$4 sm:$0xff]   ;;  %v2441_v59 = vld [vmem:[%s3592_s1 + $0x3f4] ss:$8 sps:$4 sm:$0xff]   ;;  %v2436_v60 = vld [vmem:[%s3592_s1 + $0x2f0] ss:$8 sps:$4 sm:$0xff]  }
  0x1e   :  { %v19_v42 = vld [vmem:[%s3591_s0 + $0x8] sm:$0xff]  ;;  %v2453_v3 = vld [vmem:[%s3592_s1 + $0x3d4] ss:$8 sps:$4 sm:$0xff]  }
  0x1f   :  { %1689 = vmatpush1.bf16.msra.mxu0 %v2337_v30  ;;  %v2406_v30 = vld [vmem:[%s3592_s1 + $0x240] ss:$8 sps:$4 sm:$0xff]   ;;  %v2444_v62 = vld [vmem:[%s3592_s1 + $0x2e4] ss:$8 sps:$4 sm:$0xff]  }
  0x20   :  { %1730 = vmatpush1.bf16.msra.mxu1 %v2338_v31  ;;  %1690 = vmatprep.subr.bf16.mxu0 %v2339_v32  ;;  %v2409_v31 = vld [vmem:[%s3592_s1 + $0x340] ss:$8 sps:$4 sm:$0xff]   ;;  %v2414_v32 = vld [vmem:[%s3592_s1 + $0x234] ss:$8 sps:$4 sm:$0xff]   ;;  %v2447_v63 = vld [vmem:[%s3592_s1 + $0x3e4] ss:$8 sps:$4 sm:$0xff]  }
  0x21   :  { %1731 = vmatprep.subr.bf16.mxu1 %v2341_v33  ;;  %v2417_v33 = vld [vmem:[%s3592_s1 + $0x334] ss:$8 sps:$4 sm:$0xff]  }
  0x23   :  { %1691 = vmatpush2.bf16.msra.mxu0 %v2343_v34  ;;  %v2412_v34 = vld [vmem:[%s3592_s1 + $0x230] ss:$8 sps:$4 sm:$0xff]  }
  0x24   :  { %1732 = vmatpush2.bf16.msra.mxu1 %v2344_v35  ;;  %1692 = vmatprep.subr.bf16.mxu0 %v2345_v39  ;;  %v2415_v35 = vld [vmem:[%s3592_s1 + $0x330] ss:$8 sps:$4 sm:$0xff]   ;;  %v2421_v39 = vld [vmem:[%s3592_s1 + $0x320] ss:$8 sps:$4 sm:$0xff]  }
  0x25   :  { %1733 = vmatprep.subr.bf16.mxu1 %v2347_v40  ;;  %v2426_v40 = vld [vmem:[%s3592_s1 + $0x214] ss:$8 sps:$4 sm:$0xff]  }
  0x27   :  { %1693 = vmatpush2.bf16.msra.mxu0 %v2349_v41  ;;  %v2429_v41 = vld [vmem:[%s3592_s1 + $0x314] ss:$8 sps:$4 sm:$0xff]  }
  0x28   :  { %1734 = vmatpush2.bf16.msra.mxu1 %v2350_v44  ;;  %1694 = vmatprep.subr.bf16.mxu0 %v2351_v45  ;;  %v3035_v44 = vrot.slane %v19_v42, %v2886_v49  ;;  %v43_v45 = vcombine.high %v19_v42, %v19_v42  ;;  %v2502_v42 = vld [vmem:[%s3592_s1 + $0x554] ss:$8 sps:$4 sm:$0xff]  }
  0x29   :  { %1735 = vmatprep.subr.bf16.mxu1 %v2353_v46  ;;  %v2424_v46 = vld [vmem:[%s3592_s1 + $0x210] ss:$8 sps:$4 sm:$0xff]  }
  0x2b   :  { %1695 = vmatpush2.bf16.msra.mxu0 %v2355_v47  ;;  %v2427_v47 = vld [vmem:[%s3592_s1 + $0x310] ss:$8 sps:$4 sm:$0xff]  }
  0x2c   :  { %1736 = vmatpush2.bf16.msra.mxu1 %v2356_v48  ;;  %1696 = vmatprep.subr.bf16.mxu0 %v2357_v50  ;;  %v58_v48 = vcombine.high %v3035_v44, %v3035_v44  ;;  %v3046_v50 = vrot.slane %v43_v45, %v2886_v49 }
  0x2d   :  { %1737 = vmatprep.subr.bf16.mxu1 %v2359_v51  ;;  %v2432_v51 = vld [vmem:[%s3592_s1 + $0x204] ss:$8 sps:$4 sm:$0xff]  }
  0x2e   :  { %v59_v54 = vcombine.high %v3046_v50, %v3046_v50 }
  0x2f   :  { %1697 = vmatpush2.bf16.msra.mxu0 %v2361_v53  ;;  %v115_v53 = vpack.c.bf16 %v58_v48, %v58_v48  ;;  %v2500_v48 = vld [vmem:[%s3592_s1 + $0x550] ss:$8 sps:$4 sm:$0xff]  }
  0x30   :  { %1738 = vmatpush2.bf16.msra.mxu1 %v2362_v56  ;;  %1698 = vmatprep.subr.bf16.mxu0 %v2363_v57  ;;  %v2433_v56 = vld [vmem:[%s3592_s1 + $0x300] ss:$8 sps:$4 sm:$0xff]   ;;  %v117_v57 = vpack.c.bf16 %v59_v54, %v59_v54  ;;  %v2511_v54 = vld [vmem:[%s3592_s1 + $0x434] ss:$8 sps:$4 sm:$0xff]  }
  0x31   :  { %1739 = vmatprep.subr.bf16.mxu1 %v2365_v58  ;;  %v2438_v58 = vld [vmem:[%s3592_s1 + $0x2f4] ss:$8 sps:$4 sm:$0xff]  }
  0x33   :  { %1699 = vmatpush2.bf16.msra.mxu0 %v2367_v61  ;;  %v2439_v61 = vld [vmem:[%s3592_s1 + $0x3f0] ss:$8 sps:$4 sm:$0xff]  }
  0x34   :  { %1740 = vmatpush2.bf16.msra.mxu1 %v2368_v0  ;;  %1700 = vmatprep.subr.bf16.mxu0 %v2369_v1  ;;  %v2442_v0 = vld [vmem:[%s3592_s1 + $0x2e0] ss:$8 sps:$4 sm:$0xff]  }
  0x35   :  { %1741 = vmatprep.subr.bf16.mxu1 %v2371_v2  ;;  %v2445_v1 = vld [vmem:[%s3592_s1 + $0x3e0] ss:$8 sps:$4 sm:$0xff]   ;;  %v2450_v2 = vld [vmem:[%s3592_s1 + $0x2d4] ss:$8 sps:$4 sm:$0xff]  }
  0x37   :  { %1701 = vmatpush2.bf16.msra.mxu0 %v2373_v4  ;;  %v2448_v4 = vld [vmem:[%s3592_s1 + $0x2d0] ss:$8 sps:$4 sm:$0xff]  }
  0x38   :  { %1742 = vmatpush2.bf16.msra.mxu1 %v2374_v5  ;;  %1702 = vmatprep.subr.bf16.mxu0 %v2375_v6  ;;  %v2451_v5 = vld [vmem:[%s3592_s1 + $0x3d0] ss:$8 sps:$4 sm:$0xff]   ;;  %v2456_v6 = vld [vmem:[%s3592_s1 + $0x2c4] ss:$8 sps:$4 sm:$0xff]  }
  0x39   :  { %1743 = vmatprep.subr.bf16.mxu1 %v2377_v7  ;;  %v2459_v7 = vld [vmem:[%s3592_s1 + $0x3c4] ss:$8 sps:$4 sm:$0xff]  }
  0x3b   :  { %1703 = vmatpush2.bf16.msra.mxu0 %v2379_v8  ;;  %v2454_v8 = vld [vmem:[%s3592_s1 + $0x2c0] ss:$8 sps:$4 sm:$0xff]  }
  0x3c   :  { %1744 = vmatpush2.bf16.msra.mxu1 %v2380_v9  ;;  %1704 = vmatprep.subr.bf16.mxu0 %v2381_v10  ;;  %v2457_v9 = vld [vmem:[%s3592_s1 + $0x3c0] ss:$8 sps:$4 sm:$0xff]   ;;  %v2462_v10 = vld [vmem:[%s3592_s1 + $0x2b4] ss:$8 sps:$4 sm:$0xff]  }
  0x3d   :  { %1745 = vmatprep.subr.bf16.mxu1 %v2383_v11  ;;  %v2465_v11 = vld [vmem:[%s3592_s1 + $0x3b4] ss:$8 sps:$4 sm:$0xff]  }
  0x3f   :  { %1705 = vmatpush2.bf16.msra.mxu0 %v2385_v12  ;;  %v2460_v12 = vld [vmem:[%s3592_s1 + $0x2b0] ss:$8 sps:$4 sm:$0xff]  }
  0x40   :  { %1746 = vmatpush2.bf16.msra.mxu1 %v2386_v13  ;;  %1756 = vmatprep.subr.bf16.mxu0 %v2390_v14  ;;  %v2463_v13 = vld [vmem:[%s3592_s1 + $0x3b0] ss:$8 sps:$4 sm:$0xff]   ;;  %v2468_v14 = vld [vmem:[%s3592_s1 + $0x2a4] ss:$8 sps:$4 sm:$0xff]  }
  0x41   :  { %1797 = vmatprep.subr.bf16.mxu1 %v2393_v15  ;;  %v2471_v15 = vld [vmem:[%s3592_s1 + $0x3a4] ss:$8 sps:$4 sm:$0xff]  }
  0x42   :  { %1707 = vmatmul.mubr.bf16.vlgmr.msra.gmra.mxu0 %v110_v16  ;;  %v2466_v16 = vld [vmem:[%s3592_s1 + $0x2a0] ss:$8 sps:$4 sm:$0xff]  }
  0x43   :  { %1748 = vmatmul.mubr.bf16.vlgmr.msra.gmra.mxu1 %v112_v17  ;;  %1757 = vmatpush1.bf16.msra.mxu0 %v2388_v18  ;;  %v2469_v17 = vld [vmem:[%s3592_s1 + $0x3a0] ss:$8 sps:$4 sm:$0xff]   ;;  %v2474_v18 = vld [vmem:[%s3592_s1 + $0x294] ss:$8 sps:$4 sm:$0xff]  }
  0x44   :  { %1798 = vmatpush1.bf16.msra.mxu1 %v2391_v19  ;;  %1758 = vmatprep.subr.bf16.mxu0 %v2396_v20  ;;  %v2477_v19 = vld [vmem:[%s3592_s1 + $0x394] ss:$8 sps:$4 sm:$0xff]   ;;  %v2472_v20 = vld [vmem:[%s3592_s1 + $0x290] ss:$8 sps:$4 sm:$0xff]  }
  0x45   :  { %1799 = vmatprep.subr.bf16.mxu1 %v2399_v21  ;;  %1788 = vmatprep.mubr.bf16.mxu0 %v115_v53  ;;  %v2475_v21 = vld [vmem:[%s3592_s1 + $0x390] ss:$8 sps:$4 sm:$0xff]   ;;  %v2506_v53 = vld [vmem:[%s3592_s1 + $0x540] ss:$8 sps:$4 sm:$0xff]  }
  0x46   :  { %1829 = vmatprep.mubr.bf16.mxu1 %v117_v57  ;;  %v2512_v57 = vld [vmem:[%s3592_s1 + $0x530] ss:$8 sps:$4 sm:$0xff]  }
  0x47   :  { %1759 = vmatpush1.bf16.msra.mxu0 %v2394_v22  ;;  %v2480_v22 = vld [vmem:[%s3592_s1 + $0x284] ss:$8 sps:$4 sm:$0xff]  }
  0x48   :  { %1800 = vmatpush1.bf16.msra.mxu1 %v2397_v23  ;;  %1760 = vmatprep.subr.bf16.mxu0 %v2402_v24  ;;  %v2483_v23 = vld [vmem:[%s3592_s1 + $0x384] ss:$8 sps:$4 sm:$0xff]   ;;  %v2478_v24 = vld [vmem:[%s3592_s1 + $0x280] ss:$8 sps:$4 sm:$0xff]  }
  0x49   :  { %1801 = vmatprep.subr.bf16.mxu1 %v2405_v25  ;;  %v2481_v25 = vld [vmem:[%s3592_s1 + $0x380] ss:$8 sps:$4 sm:$0xff]  }
  0x4b   :  { %1761 = vmatpush1.bf16.msra.mxu0 %v2400_v26  ;;  %v2487_v26 = vld [vmem:[%s3592_s1 + $0x474] ss:$8 sps:$4 sm:$0xff]  }
  0x4c   :  { %1802 = vmatpush1.bf16.msra.mxu1 %v2403_v27  ;;  %1762 = vmatprep.subr.bf16.mxu0 %v2408_v28  ;;  %v2490_v27 = vld [vmem:[%s3592_s1 + $0x574] ss:$8 sps:$4 sm:$0xff]   ;;  %v114_v28 = vpack.c.bf16 %v3035_v44, %v3035_v44 }
  0x4d   :  { %1803 = vmatprep.subr.bf16.mxu1 %v2411_v29  ;;  %v116_v29 = vpack.c.bf16 %v3046_v50, %v3046_v50  ;;  %v2505_v50 = vld [vmem:[%s3592_s1 + $0x444] ss:$8 sps:$4 sm:$0xff]  }
  0x4f   :  { %1763 = vmatpush1.bf16.msra.mxu0 %v2406_v30  ;;  %v2485_v30 = vld [vmem:[%s3592_s1 + $0x470] ss:$8 sps:$4 sm:$0xff]  }
  0x50   :  { %1804 = vmatpush1.bf16.msra.mxu1 %v2409_v31  ;;  %1764 = vmatprep.subr.bf16.mxu0 %v2414_v32  ;;  %v2488_v31 = vld [vmem:[%s3592_s1 + $0x570] ss:$8 sps:$4 sm:$0xff]   ;;  %v2493_v32 = vld [vmem:[%s3592_s1 + $0x464] ss:$8 sps:$4 sm:$0xff]  }
  0x51   :  { %1805 = vmatprep.subr.bf16.mxu1 %v2417_v33  ;;  %v20_v33 = vld [vmem:[%s3591_s0 + $0x10] sm:$0xff] }
  0x53   :  { %1765 = vmatpush1.bf16.msra.mxu0 %v2412_v34  ;;  %v2496_v34 = vld [vmem:[%s3592_s1 + $0x564] ss:$8 sps:$4 sm:$0xff]  }
  0x54   :  { %1806 = vmatpush1.bf16.msra.mxu1 %v2415_v35  ;;  %1766 = vmatprep.subr.bf16.mxu0 %v2420_v36  ;;  %v3184_v35 = vrot.slane %v20_v33, %v2886_v49  ;;  %v60_v36 = vcombine.high %v20_v33, %v20_v33 }
  0x55   :  { %1807 = vmatprep.subr.bf16.mxu1 %v2423_v37  ;;  %v2491_v37 = vld [vmem:[%s3592_s1 + $0x460] ss:$8 sps:$4 sm:$0xff]  }
  0x57   :  { %1767 = vmatpush1.bf16.msra.mxu0 %v2418_v38  ;;  %v75_v38 = vcombine.high %v3184_v35, %v3184_v35 }
  0x58   :  { %1808 = vmatpush1.bf16.msra.mxu1 %v2421_v39  ;;  %1768 = vmatprep.subr.bf16.mxu0 %v2426_v40  ;;  %v3192_v39 = vrot.slane %v60_v36, %v2886_v49  ;;  %v2494_v40 = vld [vmem:[%s3592_s1 + $0x560] ss:$8 sps:$4 sm:$0xff]  }
  0x59   :  { %1809 = vmatprep.subr.bf16.mxu1 %v2429_v41  ;;  %v2499_v41 = vld [vmem:[%s3592_s1 + $0x454] ss:$8 sps:$4 sm:$0xff]   ;;  %v119_v44 = vpack.c.bf16 %v75_v38, %v75_v38 }
  0x5a   :  { %v76_v45 = vcombine.high %v3192_v39, %v3192_v39 }
  0x5b   :  { %1769 = vmatpush1.bf16.msra.mxu0 %v2424_v46  ;;  %v2497_v46 = vld [vmem:[%s3592_s1 + $0x450] ss:$8 sps:$4 sm:$0xff]  }
  0x5c   :  { %1810 = vmatpush1.bf16.msra.mxu1 %v2427_v47  ;;  %1770 = vmatprep.subr.bf16.mxu0 %v2432_v51  ;;  %v121_v47 = vpack.c.bf16 %v76_v45, %v76_v45  ;;  %v2508_v51 = vld [vmem:[%s3592_s1 + $0x544] ss:$8 sps:$4 sm:$0xff]  }
  0x5d   :  { %1811 = vmatprep.subr.bf16.mxu1 %v2435_v52  ;;  %v2503_v52 = vld [vmem:[%s3592_s1 + $0x440] ss:$8 sps:$4 sm:$0xff]  }
  0x5f   :  { %1771 = vmatpush1.bf16.msra.mxu0 %v2430_v55  ;;  %v2514_v55 = vld [vmem:[%s3592_s1 + $0x534] ss:$8 sps:$4 sm:$0xff]  }
  0x60   :  { %1812 = vmatpush1.bf16.msra.mxu1 %v2433_v56  ;;  %1772 = vmatprep.subr.bf16.mxu0 %v2438_v58  ;;  %v2509_v56 = vld [vmem:[%s3592_s1 + $0x430] ss:$8 sps:$4 sm:$0xff]   ;;  %v2517_v58 = vld [vmem:[%s3592_s1 + $0x424] ss:$8 sps:$4 sm:$0xff]  }
  0x61   :  { %1813 = vmatprep.subr.bf16.mxu1 %v2441_v59  ;;  %v2520_v59 = vld [vmem:[%s3592_s1 + $0x524] ss:$8 sps:$4 sm:$0xff]  }
  0x63   :  { %1773 = vmatpush2.bf16.msra.mxu0 %v2436_v60  ;;  %v2515_v60 = vld [vmem:[%s3592_s1 + $0x420] ss:$8 sps:$4 sm:$0xff]  }
  0x64   :  { %1814 = vmatpush2.bf16.msra.mxu1 %v2439_v61  ;;  %1774 = vmatprep.subr.bf16.mxu0 %v2444_v62  ;;  %v2518_v61 = vld [vmem:[%s3592_s1 + $0x520] ss:$8 sps:$4 sm:$0xff]   ;;  %v2523_v62 = vld [vmem:[%s3592_s1 + $0x414] ss:$8 sps:$4 sm:$0xff]  }
  0x65   :  { %1815 = vmatprep.subr.bf16.mxu1 %v2447_v63  ;;  %v2526_v63 = vld [vmem:[%s3592_s1 + $0x514] ss:$8 sps:$4 sm:$0xff]  }
  0x67   :  { %1775 = vmatpush2.bf16.msra.mxu0 %v2442_v0  ;;  %v2521_v0 = vld [vmem:[%s3592_s1 + $0x410] ss:$8 sps:$4 sm:$0xff]  }
  0x68   :  { %1816 = vmatpush2.bf16.msra.mxu1 %v2445_v1  ;;  %1776 = vmatprep.subr.bf16.mxu0 %v2450_v2  ;;  %v2524_v1 = vld [vmem:[%s3592_s1 + $0x510] ss:$8 sps:$4 sm:$0xff]   ;;  %v2529_v2 = vld [vmem:[%s3592_s1 + $0x404] ss:$8 sps:$4 sm:$0xff]  }
  0x69   :  { %1817 = vmatprep.subr.bf16.mxu1 %v2453_v3  ;;  %v2532_v3 = vld [vmem:[%s3592_s1 + $0x504] ss:$8 sps:$4 sm:$0xff]  }
  0x6b   :  { %1777 = vmatpush2.bf16.msra.mxu0 %v2448_v4  ;;  %v2527_v4 = vld [vmem:[%s3592_s1 + $0x400] ss:$8 sps:$4 sm:$0xff]  }
  0x6c   :  { %1818 = vmatpush2.bf16.msra.mxu1 %v2451_v5  ;;  %1778 = vmatprep.subr.bf16.mxu0 %v2456_v6  ;;  %v2530_v5 = vld [vmem:[%s3592_s1 + $0x500] ss:$8 sps:$4 sm:$0xff]   ;;  %v2535_v6 = vld [vmem:[%s3592_s1 + $0x4f4] ss:$8 sps:$4 sm:$0xff]  }
  0x6d   :  { %1819 = vmatprep.subr.bf16.mxu1 %v2459_v7  ;;  %v2538_v7 = vld [vmem:[%s3592_s1 + $0x5f4] ss:$8 sps:$4 sm:$0xff]  }
  0x6f   :  { %1779 = vmatpush2.bf16.msra.mxu0 %v2454_v8  ;;  %v2533_v8 = vld [vmem:[%s3592_s1 + $0x4f0] ss:$8 sps:$4 sm:$0xff]  }
  0x70   :  { %1820 = vmatpush2.bf16.msra.mxu1 %v2457_v9  ;;  %1780 = vmatprep.subr.bf16.mxu0 %v2462_v10  ;;  %v2536_v9 = vld [vmem:[%s3592_s1 + $0x5f0] ss:$8 sps:$4 sm:$0xff]   ;;  %v2541_v10 = vld [vmem:[%s3592_s1 + $0x4e4] ss:$8 sps:$4 sm:$0xff]  }
  0x71   :  { %1821 = vmatprep.subr.bf16.mxu1 %v2465_v11  ;;  %v2544_v11 = vld [vmem:[%s3592_s1 + $0x5e4] ss:$8 sps:$4 sm:$0xff]  }
  0x73   :  { %1781 = vmatpush2.bf16.msra.mxu0 %v2460_v12  ;;  %v2539_v12 = vld [vmem:[%s3592_s1 + $0x4e0] ss:$8 sps:$4 sm:$0xff]  }
  0x74   :  { %1822 = vmatpush2.bf16.msra.mxu1 %v2463_v13  ;;  %1782 = vmatprep.subr.bf16.mxu0 %v2468_v14  ;;  %v2542_v13 = vld [vmem:[%s3592_s1 + $0x5e0] ss:$8 sps:$4 sm:$0xff]   ;;  %v2547_v14 = vld [vmem:[%s3592_s1 + $0x4d4] ss:$8 sps:$4 sm:$0xff]  }
  0x75   :  { %1823 = vmatprep.subr.bf16.mxu1 %v2471_v15  ;;  %v2550_v15 = vld [vmem:[%s3592_s1 + $0x5d4] ss:$8 sps:$4 sm:$0xff]  }
  0x77   :  { %1783 = vmatpush2.bf16.msra.mxu0 %v2466_v16  ;;  %v2545_v16 = vld [vmem:[%s3592_s1 + $0x4d0] ss:$8 sps:$4 sm:$0xff]  }
  0x78   :  { %1824 = vmatpush2.bf16.msra.mxu1 %v2469_v17  ;;  %1784 = vmatprep.subr.bf16.mxu0 %v2474_v18  ;;  %v2548_v17 = vld [vmem:[%s3592_s1 + $0x5d0] ss:$8 sps:$4 sm:$0xff]   ;;  %v2553_v18 = vld [vmem:[%s3592_s1 + $0x4c4] ss:$8 sps:$4 sm:$0xff]  }
  0x79   :  { %1825 = vmatprep.subr.bf16.mxu1 %v2477_v19  ;;  %v2556_v19 = vld [vmem:[%s3592_s1 + $0x5c4] ss:$8 sps:$4 sm:$0xff]  }
  0x7b   :  { %1785 = vmatpush2.bf16.msra.mxu0 %v2472_v20  ;;  %v2551_v20 = vld [vmem:[%s3592_s1 + $0x4c0] ss:$8 sps:$4 sm:$0xff]  }
  0x7c   :  { %1826 = vmatpush2.bf16.msra.mxu1 %v2475_v21  ;;  %1786 = vmatprep.subr.bf16.mxu0 %v2480_v22  ;;  %v2554_v21 = vld [vmem:[%s3592_s1 + $0x5c0] ss:$8 sps:$4 sm:$0xff]  }
  0x7d   :  { %1827 = vmatprep.subr.bf16.mxu1 %v2483_v23 }
  0x7f   :  { %1787 = vmatpush2.bf16.msra.mxu0 %v2478_v24 }
  0x80   :  { %1828 = vmatpush2.bf16.msra.mxu1 %v2481_v25  ;;  %1838 = vmatprep.subr.bf16.mxu0 %v2487_v26 }
  0x81   :  { %1879 = vmatprep.subr.bf16.mxu1 %v2490_v27 }
  0x82   :  { %1789 = vmatmul.mubr.bf16.vlgmr.msra.gmra.mxu0 %v114_v28 }
  0x83   :  { %1830 = vmatmul.mubr.bf16.vlgmr.msra.gmra.mxu1 %v116_v29  ;;  %1839 = vmatpush1.bf16.msra.mxu0 %v2485_v30 }
  0x84   :  { %1880 = vmatpush1.bf16.msra.mxu1 %v2488_v31  ;;  %1840 = vmatprep.subr.bf16.mxu0 %v2493_v32 }
  0x85   :  { %1881 = vmatprep.subr.bf16.mxu1 %v2496_v34  ;;  %1870 = vmatprep.mubr.bf16.mxu0 %v119_v44 }
  0x86   :  { %1911 = vmatprep.mubr.bf16.mxu1 %v121_v47 }
  0x87   :  { %1841 = vmatpush1.bf16.msra.mxu0 %v2491_v37 }
  0x88   :  { %1882 = vmatpush1.bf16.msra.mxu1 %v2494_v40  ;;  %1842 = vmatprep.subr.bf16.mxu0 %v2499_v41 }
  0x89   :  { %1883 = vmatprep.subr.bf16.mxu1 %v2502_v42 }
  0x8b   :  { %1843 = vmatpush1.bf16.msra.mxu0 %v2497_v46 }
  0x8c   :  { %1884 = vmatpush1.bf16.msra.mxu1 %v2500_v48  ;;  %1844 = vmatprep.subr.bf16.mxu0 %v2505_v50 }
  0x8d   :  { %1885 = vmatprep.subr.bf16.mxu1 %v2508_v51 }
  0x8f   :  { %1845 = vmatpush1.bf16.msra.mxu0 %v2503_v52 }
  0x90   :  { %1886 = vmatpush1.bf16.msra.mxu1 %v2506_v53  ;;  %1846 = vmatprep.subr.bf16.mxu0 %v2511_v54 }
  0x91   :  { %1887 = vmatprep.subr.bf16.mxu1 %v2514_v55 }
  0x93   :  { %1847 = vmatpush1.bf16.msra.mxu0 %v2509_v56 }
  0x94   :  { %1888 = vmatpush1.bf16.msra.mxu1 %v2512_v57  ;;  %1848 = vmatprep.subr.bf16.mxu0 %v2517_v58 }
  0x95   :  { %1889 = vmatprep.subr.bf16.mxu1 %v2520_v59 }
  0x97   :  { %1849 = vmatpush1.bf16.msra.mxu0 %v2515_v60 }
  0x98   :  { %1890 = vmatpush1.bf16.msra.mxu1 %v2518_v61  ;;  %1850 = vmatprep.subr.bf16.mxu0 %v2523_v62 }
  0x99   :  { %1891 = vmatprep.subr.bf16.mxu1 %v2526_v63 }
  0x9b   :  { %1851 = vmatpush1.bf16.msra.mxu0 %v2521_v0 }
  0x9c   :  { %1892 = vmatpush1.bf16.msra.mxu1 %v2524_v1  ;;  %1852 = vmatprep.subr.bf16.mxu0 %v2529_v2 }
  0x9d   :  { %1893 = vmatprep.subr.bf16.mxu1 %v2532_v3 }
  0x9f   :  { %1853 = vmatpush1.bf16.msra.mxu0 %v2527_v4 }
  0xa0   :  { %1894 = vmatpush1.bf16.msra.mxu1 %v2530_v5  ;;  %1854 = vmatprep.subr.bf16.mxu0 %v2535_v6 }
  0xa1   :  { %1895 = vmatprep.subr.bf16.mxu1 %v2538_v7 }
  0xa3   :  { %1855 = vmatpush2.bf16.msra.mxu0 %v2533_v8 }
  0xa4   :  { %1896 = vmatpush2.bf16.msra.mxu1 %v2536_v9  ;;  %1856 = vmatprep.subr.bf16.mxu0 %v2541_v10 }
  0xa5   :  { %1897 = vmatprep.subr.bf16.mxu1 %v2544_v11 }
  0xa7   :  { %1857 = vmatpush2.bf16.msra.mxu0 %v2539_v12 }
  0xa8   :  { %1898 = vmatpush2.bf16.msra.mxu1 %v2542_v13  ;;  %1858 = vmatprep.subr.bf16.mxu0 %v2547_v14 }
  0xa9   :  { %1899 = vmatprep.subr.bf16.mxu1 %v2550_v15 }
  0xab   :  { %1859 = vmatpush2.bf16.msra.mxu0 %v2545_v16 }
  0xac   :  { %1900 = vmatpush2.bf16.msra.mxu1 %v2548_v17 }
  0xad   :  { %11 = vsyncpa [#allocation5], 0  ;;  %1860 = vmatprep.subr.bf16.mxu0 %v2553_v18  ;;  %1901 = vmatprep.subr.bf16.mxu1 %v2556_v19  ;;  %v2559_v22 = vld [vmem:[%s3592_s1 + $0x4b4] ss:$8 sps:$4 sm:$0xff]   ;;  %v2557_v24 = vld [vmem:[%s3592_s1 + $0x4b0] ss:$8 sps:$4 sm:$0xff]   ;;  %v118_v48 = vpack.c.bf16 %v3184_v35, %v3184_v35  ;;  %v120_v50 = vpack.c.bf16 %v3192_v39, %v3192_v39 }
  0xae   :  { %v2562_v23 = vld [vmem:[%s3592_s1 + $0x5b4] ss:$8 sps:$4 sm:$0xff]   ;;  %v2560_v25 = vld [vmem:[%s3592_s1 + $0x5b0] ss:$8 sps:$4 sm:$0xff]   ;;  %v2565_v26 = vld [vmem:[%s3592_s1 + $0x4a4] ss:$8 sps:$4 sm:$0xff]  }
  0xaf   :  { %1861 = vmatpush2.bf16.msra.mxu0 %v2551_v20  ;;  %v2568_v27 = vld [vmem:[%s3592_s1 + $0x5a4] ss:$8 sps:$4 sm:$0xff]   ;;  %v21_v28 = vld [vmem:[%s3591_s0 + $0x18] sm:$0xff]  ;;  %v2563_v29 = vld [vmem:[%s3592_s1 + $0x4a0] ss:$8 sps:$4 sm:$0xff]   ;;  %s2725_s11 = smov [#allocation4]  }
  0xb0   :  { %1902 = vmatpush2.bf16.msra.mxu1 %v2554_v21  ;;  %1862 = vmatprep.subr.bf16.mxu0 %v2559_v22  ;;  %v2566_v30 = vld [vmem:[%s3592_s1 + $0x5a0] ss:$8 sps:$4 sm:$0xff]   ;;  %v2571_v31 = vld [vmem:[%s3592_s1 + $0x494] ss:$8 sps:$4 sm:$0xff]   ;;  %v77_v33 = vcombine.high %v21_v28, %v21_v28  ;;  %v2569_v34 = vld [vmem:[%s3592_s1 + $0x490] ss:$8 sps:$4 sm:$0xff]   ;;  %v3365_v40 = vrot.slane %v21_v28, %v2886_v49 }
  0xb1   :  { %1903 = vmatprep.subr.bf16.mxu1 %v2562_v23  ;;  %v2574_v32 = vld [vmem:[%s3592_s1 + $0x594] ss:$8 sps:$4 sm:$0xff]   ;;  %v2572_v36 = vld [vmem:[%s3592_s1 + $0x590] ss:$8 sps:$4 sm:$0xff]   ;;  %v2577_v37 = vld [vmem:[%s3592_s1 + $0x484] ss:$8 sps:$4 sm:$0xff]  }
  0xb2   :  { %v2580_v38 = vld [vmem:[%s3592_s1 + $0x584] ss:$8 sps:$4 sm:$0xff]   ;;  %v3368_v41 = vrot.slane %v77_v33, %v2886_v49  ;;  %v2575_v42 = vld [vmem:[%s3592_s1 + $0x480] ss:$8 sps:$4 sm:$0xff]   ;;  %v2584_v45 = vld [vmem:[%s3592_s1 + $0x674] ss:$8 sps:$4 sm:$0xff]   ;;  %v92_v46 = vcombine.high %v3365_v40, %v3365_v40 }
  0xb3   :  { %1863 = vmatpush2.bf16.msra.mxu0 %v2557_v24  ;;  %v2578_v44 = vld [vmem:[%s3592_s1 + $0x580] ss:$8 sps:$4 sm:$0xff]   ;;  %v2587_v49 = vld [vmem:[%s3592_s1 + $0x774] ss:$8 sps:$4 sm:$0xff]   ;;  %v2582_v51 = vld [vmem:[%s3592_s1 + $0x670] ss:$8 sps:$4 sm:$0xff]  }
  0xb4   :  { %1904 = vmatpush2.bf16.msra.mxu1 %v2560_v25  ;;  %1864 = vmatprep.subr.bf16.mxu0 %v2565_v26  ;;  %v93_v47 = vcombine.high %v3368_v41, %v3368_v41  ;;  %v2585_v52 = vld [vmem:[%s3592_s1 + $0x770] ss:$8 sps:$4 sm:$0xff]   ;;  %v2590_v53 = vld [vmem:[%s3592_s1 + $0x664] ss:$8 sps:$4 sm:$0xff]   ;;  %v123_v39 = vpack.c.bf16 %v92_v46, %v92_v46  ;;  %v2588_v55 = vld [vmem:[%s3592_s1 + $0x660] ss:$8 sps:$4 sm:$0xff]  }
  0xb5   :  { %1905 = vmatprep.subr.bf16.mxu1 %v2568_v27  ;;  %v2593_v35 = vld [vmem:[%s3592_s1 + $0x764] ss:$8 sps:$4 sm:$0xff]   ;;  %v2591_v56 = vld [vmem:[%s3592_s1 + $0x760] ss:$8 sps:$4 sm:$0xff]   ;;  %v2596_v57 = vld [vmem:[%s3592_s1 + $0x654] ss:$8 sps:$4 sm:$0xff]  }
  0xb6   :  { %v125_v54 = vpack.c.bf16 %v93_v47, %v93_v47  ;;  %v2599_v58 = vld [vmem:[%s3592_s1 + $0x754] ss:$8 sps:$4 sm:$0xff]   ;;  %v2594_v59 = vld [vmem:[%s3592_s1 + $0x650] ss:$8 sps:$4 sm:$0xff]   ;;  %v2602_v61 = vld [vmem:[%s3592_s1 + $0x644] ss:$8 sps:$4 sm:$0xff]  }
  0xb7   :  { %1865 = vmatpush2.bf16.msra.mxu0 %v2563_v29  ;;  %v2597_v60 = vld [vmem:[%s3592_s1 + $0x750] ss:$8 sps:$4 sm:$0xff]   ;;  %v2605_v62 = vld [vmem:[%s3592_s1 + $0x744] ss:$8 sps:$4 sm:$0xff]   ;;  %v2600_v63 = vld [vmem:[%s3592_s1 + $0x640] ss:$8 sps:$4 sm:$0xff]  }
  0xb8   :  { %1906 = vmatpush2.bf16.msra.mxu1 %v2566_v30  ;;  %1866 = vmatprep.subr.bf16.mxu0 %v2571_v31  ;;  %v2603_v0 = vld [vmem:[%s3592_s1 + $0x740] ss:$8 sps:$4 sm:$0xff]   ;;  %v2608_v1 = vld [vmem:[%s3592_s1 + $0x634] ss:$8 sps:$4 sm:$0xff]   ;;  %v2606_v3 = vld [vmem:[%s3592_s1 + $0x630] ss:$8 sps:$4 sm:$0xff]  }
  0xb9   :  { %1907 = vmatprep.subr.bf16.mxu1 %v2574_v32  ;;  %v2611_v2 = vld [vmem:[%s3592_s1 + $0x734] ss:$8 sps:$4 sm:$0xff]   ;;  %v2609_v4 = vld [vmem:[%s3592_s1 + $0x730] ss:$8 sps:$4 sm:$0xff]   ;;  %v2614_v5 = vld [vmem:[%s3592_s1 + $0x624] ss:$8 sps:$4 sm:$0xff]  }
  0xba   :  { %v2617_v6 = vld [vmem:[%s3592_s1 + $0x724] ss:$8 sps:$4 sm:$0xff]   ;;  %v2612_v7 = vld [vmem:[%s3592_s1 + $0x620] ss:$8 sps:$4 sm:$0xff]   ;;  %v2620_v9 = vld [vmem:[%s3592_s1 + $0x614] ss:$8 sps:$4 sm:$0xff]  }
  0xbb   :  { %1867 = vmatpush2.bf16.msra.mxu0 %v2569_v34  ;;  %v2615_v8 = vld [vmem:[%s3592_s1 + $0x720] ss:$8 sps:$4 sm:$0xff]   ;;  %v2623_v10 = vld [vmem:[%s3592_s1 + $0x714] ss:$8 sps:$4 sm:$0xff]   ;;  %v2618_v11 = vld [vmem:[%s3592_s1 + $0x610] ss:$8 sps:$4 sm:$0xff]  }
  0xbc   :  { %1908 = vmatpush2.bf16.msra.mxu1 %v2572_v36  ;;  %1868 = vmatprep.subr.bf16.mxu0 %v2577_v37  ;;  %v2621_v12 = vld [vmem:[%s3592_s1 + $0x710] ss:$8 sps:$4 sm:$0xff]   ;;  %v2626_v13 = vld [vmem:[%s3592_s1 + $0x604] ss:$8 sps:$4 sm:$0xff]   ;;  %v2624_v15 = vld [vmem:[%s3592_s1 + $0x600] ss:$8 sps:$4 sm:$0xff]  }
  0xbd   :  { %1909 = vmatprep.subr.bf16.mxu1 %v2580_v38  ;;  %v2629_v14 = vld [vmem:[%s3592_s1 + $0x704] ss:$8 sps:$4 sm:$0xff]   ;;  %v2627_v16 = vld [vmem:[%s3592_s1 + $0x700] ss:$8 sps:$4 sm:$0xff]   ;;  %v2632_v17 = vld [vmem:[%s3592_s1 + $0x6f4] ss:$8 sps:$4 sm:$0xff]  }
  0xbe   :  { %v2635_v18 = vld [vmem:[%s3592_s1 + $0x7f4] ss:$8 sps:$4 sm:$0xff]   ;;  %v2630_v19 = vld [vmem:[%s3592_s1 + $0x6f0] ss:$8 sps:$4 sm:$0xff]   ;;  %v2638_v21 = vld [vmem:[%s3592_s1 + $0x6e4] ss:$8 sps:$4 sm:$0xff]  }
  0xbf   :  { %1869 = vmatpush2.bf16.msra.mxu0 %v2575_v42  ;;  %v2633_v20 = vld [vmem:[%s3592_s1 + $0x7f0] ss:$8 sps:$4 sm:$0xff]   ;;  %v2641_v22 = vld [vmem:[%s3592_s1 + $0x7e4] ss:$8 sps:$4 sm:$0xff]   ;;  %v2636_v23 = vld [vmem:[%s3592_s1 + $0x6e0] ss:$8 sps:$4 sm:$0xff]  }
  0xc0   :  { %1910 = vmatpush2.bf16.msra.mxu1 %v2578_v44  ;;  %1920 = vmatprep.subr.bf16.mxu0 %v2584_v45  ;;  %v2639_v24 = vld [vmem:[%s3592_s1 + $0x7e0] ss:$8 sps:$4 sm:$0xff]   ;;  %v2644_v25 = vld [vmem:[%s3592_s1 + $0x6d4] ss:$8 sps:$4 sm:$0xff]   ;;  %v2642_v27 = vld [vmem:[%s3592_s1 + $0x6d0] ss:$8 sps:$4 sm:$0xff]  }
  0xc1   :  { %1961 = vmatprep.subr.bf16.mxu1 %v2587_v49  ;;  %v2647_v26 = vld [vmem:[%s3592_s1 + $0x7d4] ss:$8 sps:$4 sm:$0xff]   ;;  %v2645_v28 = vld [vmem:[%s3592_s1 + $0x7d0] ss:$8 sps:$4 sm:$0xff]   ;;  %v2650_v29 = vld [vmem:[%s3592_s1 + $0x6c4] ss:$8 sps:$4 sm:$0xff]  }
  0xc2   :  { %1871 = vmatmul.mubr.bf16.vlgmr.msra.gmra.mxu0 %v118_v48  ;;  %v2653_v30 = vld [vmem:[%s3592_s1 + $0x7c4] ss:$8 sps:$4 sm:$0xff]   ;;  %v2648_v31 = vld [vmem:[%s3592_s1 + $0x6c0] ss:$8 sps:$4 sm:$0xff]   ;;  %v2656_v33 = vld [vmem:[%s3592_s1 + $0x6b4] ss:$8 sps:$4 sm:$0xff]  }
  0xc3   :  { %1912 = vmatmul.mubr.bf16.vlgmr.msra.gmra.mxu1 %v120_v50  ;;  %1921 = vmatpush1.bf16.msra.mxu0 %v2582_v51  ;;  %v2651_v32 = vld [vmem:[%s3592_s1 + $0x7c0] ss:$8 sps:$4 sm:$0xff]   ;;  %v2659_v34 = vld [vmem:[%s3592_s1 + $0x7b4] ss:$8 sps:$4 sm:$0xff]   ;;  %v2654_v36 = vld [vmem:[%s3592_s1 + $0x6b0] ss:$8 sps:$4 sm:$0xff]  }
  0xc4   :  { %1962 = vmatpush1.bf16.msra.mxu1 %v2585_v52  ;;  %1922 = vmatprep.subr.bf16.mxu0 %v2590_v53  ;;  %v2657_v37 = vld [vmem:[%s3592_s1 + $0x7b0] ss:$8 sps:$4 sm:$0xff]   ;;  %v2662_v38 = vld [vmem:[%s3592_s1 + $0x6a4] ss:$8 sps:$4 sm:$0xff]   ;;  %v2660_v44 = vld [vmem:[%s3592_s1 + $0x6a0] ss:$8 sps:$4 sm:$0xff]  }
  0xc5   :  { %1963 = vmatprep.subr.bf16.mxu1 %v2593_v35  ;;  %1952 = vmatprep.mubr.bf16.mxu0 %v123_v39  ;;  %v2665_v42 = vld [vmem:[%s3592_s1 + $0x7a4] ss:$8 sps:$4 sm:$0xff]   ;;  %v2663_v45 = vld [vmem:[%s3592_s1 + $0x7a0] ss:$8 sps:$4 sm:$0xff]   ;;  %v2668_v49 = vld [vmem:[%s3592_s1 + $0x694] ss:$8 sps:$4 sm:$0xff]  }
  0xc6   :  { %1993 = vmatprep.mubr.bf16.mxu1 %v125_v54  ;;  %v2671_v46 = vld [vmem:[%s3592_s1 + $0x794] ss:$8 sps:$4 sm:$0xff]   ;;  %v2666_v47 = vld [vmem:[%s3592_s1 + $0x690] ss:$8 sps:$4 sm:$0xff]   ;;  %v2674_v50 = vld [vmem:[%s3592_s1 + $0x684] ss:$8 sps:$4 sm:$0xff]  }
  0xc7   :  { %1923 = vmatpush1.bf16.msra.mxu0 %v2588_v55  ;;  %v2669_v48 = vld [vmem:[%s3592_s1 + $0x790] ss:$8 sps:$4 sm:$0xff]   ;;  %v2677_v51 = vld [vmem:[%s3592_s1 + $0x784] ss:$8 sps:$4 sm:$0xff]   ;;  %v2672_v52 = vld [vmem:[%s3592_s1 + $0x680] ss:$8 sps:$4 sm:$0xff]   ;;  %v122_v55 = vpack.c.bf16 %v3365_v40, %v3365_v40 }
  0xc8   :  { %1964 = vmatpush1.bf16.msra.mxu1 %v2591_v56  ;;  %1924 = vmatprep.subr.bf16.mxu0 %v2596_v57  ;;  %v2675_v53 = vld [vmem:[%s3592_s1 + $0x780] ss:$8 sps:$4 sm:$0xff]   ;;  %v386_v35 = vsub.s32 0, %v2868_v43  ;;  %v390_v54 = vsub.s32 1, %v2868_v43  ;;  %v124_v56 = vpack.c.bf16 %v3368_v41, %v3368_v41  ;;  %s2724_s1 = smov [#allocation2]   ;;  %s2020_s12 = sshll.u32 %s2725_s11, 4  ;;  %s2021_s12 = int_to_ptr.vmem [resolvable:$true] %s2020_s12 }
  0xc9   :  { %1965 = vmatprep.subr.bf16.mxu1 %v2599_v58  ;;  %v382_v39 = vld [vmem:[%s3593_s2] sm:$0x3]  ;;  %s2010_s2 = sshll.u32 %s2724_s1, 4  ;;  %s2011_s2 = int_to_ptr.vmem [resolvable:$true] %s2010_s2 }
  0xca   :  { %v387_v57 = vrot.slane %v382_v39, %v386_v35  ;;  %v391_v58 = vrot.slane %v382_v39, %v390_v54  ;;  %s2679_s13 = scalar_lea.vmem %s2011_s2, 32  ;;  %p2684_p1 = scmp.lt.s32.totalorder %s2011_s2, %s2011_s2 }
  0xcb   :  { %1925 = vmatpush1.bf16.msra.mxu0 %v2594_v59  ;;  %p2680_p0 = scmp.ne.s32.totalorder %s2011_s2, %s2679_s13  ;;  %p2685_p2 = scmp.lt.s32.totalorder %s2679_s13, %s2679_s13 }
  0xcc   :  { %1966 = vmatpush1.bf16.msra.mxu1 %v2597_v60  ;;  %1926 = vmatprep.subr.bf16.mxu0 %v2602_v61 }
  0xcd   :  { %1967 = vmatprep.subr.bf16.mxu1 %v2605_v62  ;;  %p2686_p3 = por %p2685_p2, %p2684_p1 }
  0xcf   :  { %1927 = vmatpush1.bf16.msra.mxu0 %v2600_v63  ;;  %p2687_p4 = pnand %p2686_p3, %p2680_p0 }
  0xd0   :  { %1968 = vmatpush1.bf16.msra.mxu1 %v2603_v0  ;;  %1928 = vmatprep.subr.bf16.mxu0 %v2608_v1 }
  0xd1   :  { %1969 = vmatprep.subr.bf16.mxu1 %v2611_v2 }
  0xd3   :  { %1929 = vmatpush1.bf16.msra.mxu0 %v2606_v3 }
  0xd4   :  { %1970 = vmatpush1.bf16.msra.mxu1 %v2609_v4  ;;  %1930 = vmatprep.subr.bf16.mxu0 %v2614_v5 }
  0xd5   :  { %1971 = vmatprep.subr.bf16.mxu1 %v2617_v6 }
  0xd7   :  { %1931 = vmatpush1.bf16.msra.mxu0 %v2612_v7 }
  0xd8   :  { %1972 = vmatpush1.bf16.msra.mxu1 %v2615_v8  ;;  %1932 = vmatprep.subr.bf16.mxu0 %v2620_v9 }
  0xd9   :  { %1973 = vmatprep.subr.bf16.mxu1 %v2623_v10 }
  0xdb   :  { %1933 = vmatpush1.bf16.msra.mxu0 %v2618_v11 }
  0xdc   :  { %1974 = vmatpush1.bf16.msra.mxu1 %v2621_v12  ;;  %1934 = vmatprep.subr.bf16.mxu0 %v2626_v13 }
  0xdd   :  { %1975 = vmatprep.subr.bf16.mxu1 %v2629_v14 }
  0xdf   :  { %1935 = vmatpush1.bf16.msra.mxu0 %v2624_v15 }
  0xe0   :  { %1976 = vmatpush1.bf16.msra.mxu1 %v2627_v16  ;;  %1936 = vmatprep.subr.bf16.mxu0 %v2632_v17 }
  0xe1   :  { %1977 = vmatprep.subr.bf16.mxu1 %v2635_v18 }
  0xe3   :  { %1937 = vmatpush2.bf16.msra.mxu0 %v2630_v19 }
  0xe4   :  { %1978 = vmatpush2.bf16.msra.mxu1 %v2633_v20  ;;  %1938 = vmatprep.subr.bf16.mxu0 %v2638_v21 }
  0xe5   :  { %1979 = vmatprep.subr.bf16.mxu1 %v2641_v22 }
  0xe7   :  { %1939 = vmatpush2.bf16.msra.mxu0 %v2636_v23 }
  0xe8   :  { %1980 = vmatpush2.bf16.msra.mxu1 %v2639_v24  ;;  %1940 = vmatprep.subr.bf16.mxu0 %v2644_v25 }
  0xe9   :  { %1981 = vmatprep.subr.bf16.mxu1 %v2647_v26 }
  0xeb   :  { %1941 = vmatpush2.bf16.msra.mxu0 %v2642_v27 }
  0xec   :  { %1982 = vmatpush2.bf16.msra.mxu1 %v2645_v28  ;;  %1942 = vmatprep.subr.bf16.mxu0 %v2650_v29 }
  0xed   :  { %1983 = vmatprep.subr.bf16.mxu1 %v2653_v30 }
  0xef   :  { %1943 = vmatpush2.bf16.msra.mxu0 %v2648_v31 }
  0xf0   :  { %1984 = vmatpush2.bf16.msra.mxu1 %v2651_v32  ;;  %1944 = vmatprep.subr.bf16.mxu0 %v2656_v33 }
  0xf1   :  { %1985 = vmatprep.subr.bf16.mxu1 %v2659_v34 }
  0xf3   :  { %1945 = vmatpush2.bf16.msra.mxu0 %v2654_v36 }
  0xf4   :  { %1986 = vmatpush2.bf16.msra.mxu1 %v2657_v37  ;;  %1946 = vmatprep.subr.bf16.mxu0 %v2662_v38 }
  0xf5   :  { %1987 = vmatprep.subr.bf16.mxu1 %v2665_v42 }
  0xf7   :  { %1947 = vmatpush2.bf16.msra.mxu0 %v2660_v44 }
  0xf8   :  { %1988 = vmatpush2.bf16.msra.mxu1 %v2663_v45  ;;  %1948 = vmatprep.subr.bf16.mxu0 %v2668_v49 }
  0xf9   :  { %1989 = vmatprep.subr.bf16.mxu1 %v2671_v46 }
  0xfb   :  { %1949 = vmatpush2.bf16.msra.mxu0 %v2666_v47 }
  0xfc   :  { %1990 = vmatpush2.bf16.msra.mxu1 %v2669_v48  ;;  %1950 = vmatprep.subr.bf16.mxu0 %v2674_v50 }
  0xfd   :  { %1991 = vmatprep.subr.bf16.mxu1 %v2677_v51 }
  0xff   :  { %1951 = vmatpush2.bf16.msra.mxu0 %v2672_v52 }
 0x100   :  { %1992 = vmatpush2.bf16.msra.mxu1 %v2675_v53 }
 0x102   :  { %v1708_v59 = vpop.f32.mrf.mxu0  ;;  %1953 = vmatmul.mubr.bf16.vlgmr.msra.gmra.mxu0 %v122_v55 }
 0x103   :  { %v1749_v60 = vpop.f32.mrf.mxu1  ;;  %1994 = vmatmul.mubr.bf16.vlgmr.msra.gmra.mxu1 %v124_v56  ;;  %v1709_v61 = vadd.f32 %v1708_v59, %v387_v57 }
 0x104   :  { %v1710_v62 = vpop.f32.mrf.mxu0 }
 0x105   :  { %v1751_v63 = vpop.f32.mrf.mxu1  ;;  %v1750_v0 = vadd.f32 %v1749_v60, %v1709_v61  ;;  %v1711_v1 = vadd.f32 %v1710_v62, %v391_v58 }
 0x106   :  { %v1712_v43 = vpop.f32.mrf.mxu0 }
 0x107   :  { %v1753_v2 = vpop.f32.mrf.mxu1  ;;  %v1752_v3 = vadd.f32 %v1751_v63, %v1711_v1 }
 0x108   :  { %v1713_v40 = vpop.f32.mrf.mxu0 }
 0x109   :  { %v1754_v4 = vpop.f32.mrf.mxu1 }
 0x142   :  { %v1790_v5 = vpop.f32.mrf.mxu0 }
 0x143   :  { %v1831_v41 = vpop.f32.mrf.mxu1  ;;  %v1791_v6 = vadd.f32 %v1790_v5, %v1750_v0 }
 0x144   :  { %v1792_v7 = vpop.f32.mrf.mxu0 }
 0x145   :  { %v1833_v8 = vpop.f32.mrf.mxu1  ;;  %v1832_v9 = vadd.f32 %v1831_v41, %v1791_v6  ;;  %v1793_v10 = vadd.f32 %v1792_v7, %v1752_v3 }
 0x146   :  { %v1794_v11 = vpop.f32.mrf.mxu0 }
 0x147   :  { %v1835_v12 = vpop.f32.mrf.mxu1  ;;  %v1834_v13 = vadd.f32 %v1833_v8, %v1793_v10 }
 0x148   :  { %v1795_v14 = vpop.f32.mrf.mxu0 }
 0x149   :  { %v1836_v15 = vpop.f32.mrf.mxu1 }
 0x182   :  { %v1872_v16 = vpop.f32.mrf.mxu0 }
 0x183   :  { %v1913_v17 = vpop.f32.mrf.mxu1  ;;  %v1873_v24 = vadd.f32 %v1872_v16, %v1832_v9 }
 0x184   :  { %v1874_v18 = vpop.f32.mrf.mxu0 }
 0x185   :  { %v1915_v19 = vpop.f32.mrf.mxu1  ;;  %v1875_v25 = vadd.f32 %v1874_v18, %v1834_v13  ;;  %v1914_v26 = vadd.f32 %v1913_v17, %v1873_v24 }
 0x186   :  { %v1876_v20 = vpop.f32.mrf.mxu0 }
 0x187   :  { %v1917_v21 = vpop.f32.mrf.mxu1  ;;  %v1916_v29 = vadd.f32 %v1915_v19, %v1875_v25 }
 0x188   :  { %v1877_v22 = vpop.f32.mrf.mxu0 }
 0x189   :  { %v1918_v23 = vpop.f32.mrf.mxu1 }
 0x1c2   :  { %v1954_v27 = vpop.f32.mrf.mxu0 }
 0x1c3   :  { %v1995_v28 = vpop.f32.mrf.mxu1  ;;  %v1955_v30 = vadd.f32 %v1954_v27, %v1914_v26 }
 0x1c4   :  { %v1956_v31 = vpop.f32.mrf.mxu0 }
 0x1c5   :  { %v1997_v32 = vpop.f32.mrf.mxu1  ;;  %v1996_v33 = vadd.f32 %v1995_v28, %v1955_v30  ;;  %v1957_v34 = vadd.f32 %v1956_v31, %v1916_v29 }
 0x1c6   :  { %v1958_v36 = vpop.f32.mrf.mxu0 }
 0x1c7   :  { %v1999_v37 = vpop.f32.mrf.mxu1  ;;  %2002 = vst [vmem:[#allocation2] sm:$0x3] %v1996_v33  ;;  %v1998_v38 = vadd.f32 %v1997_v32, %v1957_v34 }
 0x1c8   :  { %v1959_v42 = vpop.f32.mrf.mxu0 }
 0x1c9   :  { %v2000_v44 = vpop.f32.mrf.mxu1 }
 0x1ca   :  { %2690 = shalt.err (!%p2687_p4)
}
 0x1cb   :  { %2013 = dma.vmem_to_hbm [thread:$0]  %s2011_s2, 32, %s3594_s3, [#allocation3]   ;;  %2003 = vst [vmem:[#allocation4] sm:$0x3] %v1998_v38 }
 0x1cc   :  { %s2699_s16 = scalar_lea.vmem %s2021_s12, 32  ;;  %p2704_p6 = scmp.lt.s32.totalorder %s2021_s12, %s2021_s12 }
 0x1cd   :  { %p2700_p5 = scmp.ne.s32.totalorder %s2021_s12, %s2699_s16  ;;  %p2705_p7 = scmp.lt.s32.totalorder %s2699_s16, %s2699_s16 }
 0x1cf   :  { %p2706_p8 = por %p2705_p7, %p2704_p6 }
 0x1d1   :  { %p2707_p9 = pnand %p2706_p8, %p2700_p5 }
 0x1d3   :  { %2710 = shalt.err (!%p2707_p9)
}
 0x1d4   :  { %2023 = dma.vmem_to_hbm [thread:$0]  %s2021_s12, 32, %s3595_s4, [#allocation5]  }
 0x1d5   :  { %2719 = dma.done.wait [#allocation3], 32  }
 0x1d6   :  { %2720 = vsyncadd [#allocation3], 4294967264 }
 0x1d7   :  { %2721 = dma.done.wait [#allocation5], 32  }
 0x1d8   :  { %2722 = vsyncadd [#allocation5], 4294967264 }
 0x1d9   :  { %2030 = vsyncpa [#allocation3], 1 }
 0x1da   :  { %2031 = vsyncpa [#allocation5], 1 }

</bundles_post_ra>
